<compile_context>
chip_gen: v7x
topology: tpu7x:2x2x1
jax: 0.10.0
libtpu: 0.0.40
codegen_flags: <defaults>
</compile_context>

<pallas_src>
import jax
import jax.numpy as jnp
from jax.experimental import pallas as pl
from jax.experimental.pallas import tpu as pltpu

SEQ_LEN = 11               # CDR3 positions
VOCAB = 20                 # amino acids
D_IN = SEQ_LEN * VOCAB     # 220
D_H1, D_H2, D_OUT = 300, 100, 40
D_IN_PAD = 256             # lane-dense padded widths (kernel-internal)
D_H1_PAD = 384
D_H2_PAD = 128
D_OUT_PAD = 128
BN_EPS = 1e-5


def encoder_cdr3_kernel(
    x_ref,     # (B, 11)        bf16 flattened hot-column indices (pos*20 + aa)
    w1_ref,    # (256, 384)     bf16 (real block [220,300], pads zero)
    bn1_ref,   # (2, 384)       f32  [gamma; beta] (pads zero)
    w2_ref,    # (384, 128)     bf16 (real block [300,100])
    bn2_ref,   # (2, 128)       f32
    w3_ref,    # (128, 128)     bf16 (real block [100,40])
    bn3_ref,   # (2, 128)       f32
    o_ref,     # (B, 128)       f32
):
    B = x_ref.shape[0]
    inv_b = 1.0 / B
    ones_row = jnp.ones((1, B), jnp.float32)

    def bn_relu(h, bn):
        # Cross-sublane batch reductions on the MXU (VPU stays free for the
        # folded scale/shift FMA below).  Single sweep: var = E[h^2] - mean^2,
        # clamped at 0 against cancellation.
        s = jnp.dot(ones_row, h, preferred_element_type=jnp.float32)        # (1,N)
        ss = jnp.dot(ones_row, h * h, preferred_element_type=jnp.float32)   # (1,N)
        mean = s * inv_b
        var = jnp.maximum(ss * inv_b - mean * mean, 0.0)
        scale = bn[0:1, :] * jax.lax.rsqrt(var + BN_EPS)
        shift = bn[1:2, :] - mean * scale
        return jnp.maximum(h * scale + shift, 0.0)

    # --- one-hot built in VMEM, exactly (no gathers, no reshapes) ------------
    # expand[n, c] = 1 iff column c belongs to position n  (c in [20n, 20n+20))
    # x_exp[b, c]  = x[b, c // 20]  (flattened hot index of that position)
    # onehot[b, c] = (x_exp[b, c] == c)   — exact integer compare in f32.
    col_i = jax.lax.broadcasted_iota(jnp.int32, (SEQ_LEN, D_IN_PAD), 1)
    row_i = jax.lax.broadcasted_iota(jnp.int32, (SEQ_LEN, D_IN_PAD), 0)
    expand = jnp.logical_and(col_i >= row_i * VOCAB,
                             col_i < (row_i + 1) * VOCAB).astype(jnp.bfloat16)
    x_exp = jnp.dot(x_ref[...], expand, preferred_element_type=jnp.float32)  # (B,256)
    col_f = jax.lax.broadcasted_iota(jnp.int32, (1, D_IN_PAD), 1).astype(jnp.float32)
    onehot = (x_exp == col_f).astype(jnp.bfloat16)                           # (B,256)

    # --- Linear(220,300 pad 256x384) [bias cancelled by BN] + BN + ReLU ------
    h = jnp.dot(onehot, w1_ref[...], preferred_element_type=jnp.float32)
    h = bn_relu(h, bn1_ref[...])

    # --- Linear(300,100 pad 384x128) + BN + ReLU ------------------------------
    h = jnp.dot(h.astype(jnp.bfloat16), w2_ref[...],
                preferred_element_type=jnp.float32)
    h = bn_relu(h, bn2_ref[...])

    # --- Linear(100,40 pad 128x128) + BN + ReLU -------------------------------
    h = jnp.dot(h.astype(jnp.bfloat16), w3_ref[...],
                preferred_element_type=jnp.float32)
    h = bn_relu(h, bn3_ref[...])

    o_ref[...] = h.astype(o_ref.dtype)


def encoder_cdr3_forward(x_cat, params):
    """x_cat: (B, SEQ_LEN) int32 indices in [0, VOCAB). Returns (B, 40) f32."""
    B = x_cat.shape[0]
    # Flattened hot-column index per position: pos*20 + aa (<= 219, exact in
    # bf16) — 22 B/row of input instead of an 880 B/row f32 one-hot.
    offsets = jnp.arange(SEQ_LEN, dtype=jnp.int32) * VOCAB
    x_off = (x_cat + offsets[None, :]).astype(jnp.bfloat16)

    operands = (x_off,
                params["w1"], params["bn1"],
                params["w2"], params["bn2"],
                params["w3"], params["bn3"])
    vmem_spec = pl.BlockSpec(memory_space=pltpu.MemorySpace.VMEM)

    weight_bytes = (D_IN_PAD * D_H1_PAD + D_H1_PAD * D_H2_PAD
                    + D_H2_PAD * D_OUT_PAD) * 2
    flops = 2 * B * (SEQ_LEN * D_IN_PAD
                     + D_IN_PAD * D_H1_PAD + D_H1_PAD * D_H2_PAD
                     + D_H2_PAD * D_OUT_PAD
                     + 2 * (D_H1_PAD + D_H2_PAD + D_OUT_PAD))   # BN sum/sumsq dots
    bytes_accessed = (B * SEQ_LEN * 2
                      + weight_bytes
                      + 2 * (D_H1_PAD + D_H2_PAD + D_OUT_PAD) * 4
                      + B * D_OUT_PAD * 4)

    # Whole-batch-resident design: raise scoped VMEM above the 16/32 MiB
    # defaults, capped at 64 MiB so it still fits v7x's physical budget.
    act_bytes = B * (D_IN_PAD * (2 + 4) + D_H1_PAD * 8 + D_H2_PAD * 8 + D_OUT_PAD * 8)
    vmem_limit = int(min(64 * 2**20, max(32 * 2**20, 2 * (act_bytes + weight_bytes))))

    out = pl.pallas_call(
        encoder_cdr3_kernel,
        out_shape=jax.ShapeDtypeStruct((B, D_OUT_PAD), jnp.float32),
        in_specs=[vmem_spec] * len(operands),
        out_specs=vmem_spec,
        compiler_params=pltpu.CompilerParams(vmem_limit_bytes=vmem_limit),
        cost_estimate=pl.CostEstimate(
            flops=flops,
            transcendentals=D_H1_PAD + D_H2_PAD + D_OUT_PAD,   # rsqrt per BN feature
            bytes_accessed=bytes_accessed,
        ),
    )(*operands)
    # TODO(synk): keep the padded (B,128) slab downstream (or emit bf16) to
    # skip this XLA slice copy when the consumer can take it.
    return out[:, :D_OUT]


def encoder_cdr3_reference(x_cat, params):
    """Pure-JAX reference mirroring the kernel numerics (bf16 MXU operands,
    f32 folded-BN math, no biases, training-mode batch statistics)."""
    B = x_cat.shape[0]
    onehot = jax.nn.one_hot(x_cat, VOCAB, dtype=jnp.bfloat16).reshape(B, D_IN)
    onehot = jnp.pad(onehot, ((0, 0), (0, D_IN_PAD - D_IN)))

    def bn_relu(h, bn):
        mean = jnp.mean(h, axis=0, keepdims=True)
        var = jnp.maximum(jnp.mean(h * h, axis=0, keepdims=True) - mean * mean, 0.0)
        scale = bn[0:1, :] * jax.lax.rsqrt(var + BN_EPS)
        shift = bn[1:2, :] - mean * scale
        return jnp.maximum(h * scale + shift, 0.0)

    h = jnp.dot(onehot, params["w1"], preferred_element_type=jnp.float32)
    h = bn_relu(h, params["bn1"])
    h = jnp.dot(h.astype(jnp.bfloat16), params["w2"], preferred_element_type=jnp.float32)
    h = bn_relu(h, params["bn2"])
    h = jnp.dot(h.astype(jnp.bfloat16), params["w3"], preferred_element_type=jnp.float32)
    h = bn_relu(h, params["bn3"])
    return h[:, :D_OUT]


def init_params(key):
    """Deterministic synthetic parameters.

    Linear weights are pre-transposed to (in, out), zero-padded to lane-dense
    widths (256/384/128/128) and stored in bf16; Linear biases are omitted
    (exactly cancelled by training-mode BatchNorm).  Per-layer BatchNorm
    gamma/beta are packed as a (2, features_padded) f32 array with zeros in
    the pad region so padded channels stay identically zero.
    """
    ks = jax.random.split(key, 3)

    def lin_w(k, d_in, d_out, d_in_pad, d_out_pad):
        scale = 1.0 / jnp.sqrt(d_in)
        w = jax.random.uniform(k, (d_in, d_out), jnp.float32, -scale, scale)
        w = jnp.pad(w, ((0, d_in_pad - d_in), (0, d_out_pad - d_out)))
        return w.astype(jnp.bfloat16)

    def bn(n, n_pad):
        gamma = jnp.pad(jnp.ones((1, n), jnp.float32), ((0, 0), (0, n_pad - n)))
        beta = jnp.zeros((1, n_pad), jnp.float32)
        return jnp.concatenate([gamma, beta], axis=0)   # (2, n_pad)

    return {
        "w1": lin_w(ks[0], D_IN, D_H1, D_IN_PAD, D_H1_PAD),
        "bn1": bn(D_H1, D_H1_PAD),
        "w2": lin_w(ks[1], D_H1, D_H2, D_H1_PAD, D_H2_PAD),
        "bn2": bn(D_H2, D_H2_PAD),
        "w3": lin_w(ks[2], D_H2, D_OUT, D_H2_PAD, D_OUT_PAD),
        "bn3": bn(D_OUT, D_OUT_PAD),
    }


if __name__ == "__main__":
    key = jax.random.PRNGKey(0)
    k_param, k_x = jax.random.split(key)

    B = 8
    params = init_params(k_param)
    x_cat = jax.random.randint(k_x, (B, SEQ_LEN), 0, VOCAB, dtype=jnp.int32)

    out = encoder_cdr3_forward(x_cat, params)
    out = jax.block_until_ready(out)

    assert out.shape == (B, D_OUT), out.shape
    assert out.dtype == jnp.float32, out.dtype
    assert bool(jnp.all(jnp.isfinite(out))), "non-finite output"
    assert bool(jnp.all(out >= 0.0)), "ReLU output must be non-negative"

    ref = jax.block_until_ready(encoder_cdr3_reference(x_cat, params))
    assert bool(jnp.allclose(out, ref, atol=5e-2, rtol=5e-2)), "kernel/reference mismatch"

    print("KERNEL_OK")
</pallas_src>

<mosaic_0001>
module attributes {stable_mosaic.version = 11 : i64} {
  func.func @encoder_cdr3_kernel(%arg0: memref<8x11xbf16, #tpu.memory_space<vmem>>, %arg1: memref<256x384xbf16, #tpu.memory_space<vmem>>, %arg2: memref<2x384xf32, #tpu.memory_space<vmem>>, %arg3: memref<384x128xbf16, #tpu.memory_space<vmem>>, %arg4: memref<2x128xf32, #tpu.memory_space<vmem>>, %arg5: memref<128x128xbf16, #tpu.memory_space<vmem>>, %arg6: memref<2x128xf32, #tpu.memory_space<vmem>>, %arg7: memref<8x128xf32, #tpu.memory_space<vmem>>) attributes {dimension_semantics = [], scalar_prefetch = 0 : i64, scratch_operands = 0 : i64, tpu.core_type = #tpu.core_type<tc>} {
    %cst = arith.constant 1.000000e+00 : f32
    %0 = vector.broadcast %cst : f32 to vector<1x8xf32>
    %1 = tpu.iota {dimensions = array<i32: 1>} : vector<11x256xi32>
    %2 = tpu.iota {dimensions = array<i32: 0>} : vector<11x256xi32>
    %c20_i32 = arith.constant 20 : i32
    %3 = vector.broadcast %c20_i32 : i32 to vector<11x256xi32>
    %4 = arith.muli %2, %3 : vector<11x256xi32>
    %5 = arith.cmpi sge, %1, %4 : vector<11x256xi32>
    %c1_i32 = arith.constant 1 : i32
    %6 = vector.broadcast %c1_i32 : i32 to vector<11x256xi32>
    %7 = arith.addi %2, %6 : vector<11x256xi32>
    %c20_i32_0 = arith.constant 20 : i32
    %8 = vector.broadcast %c20_i32_0 : i32 to vector<11x256xi32>
    %9 = arith.muli %7, %8 : vector<11x256xi32>
    %10 = arith.cmpi slt, %1, %9 : vector<11x256xi32>
    %11 = arith.andi %5, %10 : vector<11x256xi1>
    %12 = arith.extui %11 : vector<11x256xi1> to vector<11x256xi32>
    %13 = arith.sitofp %12 : vector<11x256xi32> to vector<11x256xf32>
    %14 = arith.truncf %13 : vector<11x256xf32> to vector<11x256xbf16>
    %c0 = arith.constant 0 : index
    %c0_1 = arith.constant 0 : index
    %15 = vector.load %arg0[%c0, %c0_1] : memref<8x11xbf16, #tpu.memory_space<vmem>>, vector<8x11xbf16>
    %cst_2 = arith.constant dense<0.000000e+00> : vector<8x256xf32>
    %16 = tpu.matmul %15, %14, %cst_2 {dimension_numbers = #tpu.dot_dimension_numbers<[1], [0], [0], [1], [0, 0, 1, 1], [], []>} : vector<8x11xbf16>, vector<11x256xbf16>, vector<8x256xf32> -> vector<8x256xf32>
    %17 = tpu.iota {dimensions = array<i32: 1>} : vector<1x256xi32>
    %18 = arith.sitofp %17 : vector<1x256xi32> to vector<1x256xf32>
    %19 = vector.broadcast %18 : vector<1x256xf32> to vector<8x256xf32>
    %20 = arith.cmpf oeq, %16, %19 : vector<8x256xf32>
    %21 = arith.extui %20 : vector<8x256xi1> to vector<8x256xi32>
    %22 = arith.sitofp %21 : vector<8x256xi32> to vector<8x256xf32>
    %23 = arith.truncf %22 : vector<8x256xf32> to vector<8x256xbf16>
    %c0_3 = arith.constant 0 : index
    %c0_4 = arith.constant 0 : index
    %24 = vector.load %arg1[%c0_3, %c0_4] : memref<256x384xbf16, #tpu.memory_space<vmem>>, vector<256x384xbf16>
    %cst_5 = arith.constant dense<0.000000e+00> : vector<8x384xf32>
    %25 = tpu.matmul %23, %24, %cst_5 {dimension_numbers = #tpu.dot_dimension_numbers<[1], [0], [0], [1], [0, 0, 1, 1], [], []>} : vector<8x256xbf16>, vector<256x384xbf16>, vector<8x384xf32> -> vector<8x384xf32>
    %c0_6 = arith.constant 0 : index
    %c0_7 = arith.constant 0 : index
    %26 = vector.load %arg2[%c0_6, %c0_7] : memref<2x384xf32, #tpu.memory_space<vmem>>, vector<2x384xf32>
    %cst_8 = arith.constant dense<0.000000e+00> : vector<1x384xf32>
    %27 = tpu.matmul %0, %25, %cst_8 {dimension_numbers = #tpu.dot_dimension_numbers<[1], [0], [0], [1], [0, 0, 1, 1], [], []>} : vector<1x8xf32>, vector<8x384xf32>, vector<1x384xf32> -> vector<1x384xf32>
    %28 = arith.mulf %25, %25 : vector<8x384xf32>
    %cst_9 = arith.constant dense<0.000000e+00> : vector<1x384xf32>
    %29 = tpu.matmul %0, %28, %cst_9 {dimension_numbers = #tpu.dot_dimension_numbers<[1], [0], [0], [1], [0, 0, 1, 1], [], []>} : vector<1x8xf32>, vector<8x384xf32>, vector<1x384xf32> -> vector<1x384xf32>
    %cst_10 = arith.constant 1.250000e-01 : f32
    %30 = vector.broadcast %cst_10 : f32 to vector<1x384xf32>
    %31 = arith.mulf %27, %30 : vector<1x384xf32>
    %cst_11 = arith.constant 1.250000e-01 : f32
    %32 = vector.broadcast %cst_11 : f32 to vector<1x384xf32>
    %33 = arith.mulf %29, %32 : vector<1x384xf32>
    %34 = arith.mulf %31, %31 : vector<1x384xf32>
    %35 = arith.subf %33, %34 : vector<1x384xf32>
    %cst_12 = arith.constant 0.000000e+00 : f32
    %36 = vector.broadcast %cst_12 : f32 to vector<1x384xf32>
    %37 = arith.maximumf %35, %36 : vector<1x384xf32>
    %38 = vector.extract_strided_slice %26 {offsets = [0, 0], sizes = [1, 384], strides = [1, 1]} : vector<2x384xf32> to vector<1x384xf32>
    %cst_13 = arith.constant 9.99999974E-6 : f32
    %39 = vector.broadcast %cst_13 : f32 to vector<1x384xf32>
    %40 = arith.addf %37, %39 : vector<1x384xf32>
    %41 = math.rsqrt %40 : vector<1x384xf32>
    %42 = arith.mulf %38, %41 : vector<1x384xf32>
    %43 = vector.extract_strided_slice %26 {offsets = [1, 0], sizes = [1, 384], strides = [1, 1]} : vector<2x384xf32> to vector<1x384xf32>
    %44 = arith.mulf %31, %42 : vector<1x384xf32>
    %45 = arith.subf %43, %44 : vector<1x384xf32>
    %46 = vector.broadcast %42 : vector<1x384xf32> to vector<8x384xf32>
    %47 = arith.mulf %25, %46 : vector<8x384xf32>
    %48 = vector.broadcast %45 : vector<1x384xf32> to vector<8x384xf32>
    %49 = arith.addf %47, %48 : vector<8x384xf32>
    %cst_14 = arith.constant 0.000000e+00 : f32
    %50 = vector.broadcast %cst_14 : f32 to vector<8x384xf32>
    %51 = arith.maximumf %49, %50 : vector<8x384xf32>
    %52 = arith.truncf %51 : vector<8x384xf32> to vector<8x384xbf16>
    %c0_15 = arith.constant 0 : index
    %c0_16 = arith.constant 0 : index
    %53 = vector.load %arg3[%c0_15, %c0_16] : memref<384x128xbf16, #tpu.memory_space<vmem>>, vector<384x128xbf16>
    %cst_17 = arith.constant dense<0.000000e+00> : vector<8x128xf32>
    %54 = tpu.matmul %52, %53, %cst_17 {dimension_numbers = #tpu.dot_dimension_numbers<[1], [0], [0], [1], [0, 0, 1, 1], [], []>} : vector<8x384xbf16>, vector<384x128xbf16>, vector<8x128xf32> -> vector<8x128xf32>
    %c0_18 = arith.constant 0 : index
    %c0_19 = arith.constant 0 : index
    %55 = vector.load %arg4[%c0_18, %c0_19] : memref<2x128xf32, #tpu.memory_space<vmem>>, vector<2x128xf32>
    %cst_20 = arith.constant dense<0.000000e+00> : vector<1x128xf32>
    %56 = tpu.matmul %0, %54, %cst_20 {dimension_numbers = #tpu.dot_dimension_numbers<[1], [0], [0], [1], [0, 0, 1, 1], [], []>} : vector<1x8xf32>, vector<8x128xf32>, vector<1x128xf32> -> vector<1x128xf32>
    %57 = arith.mulf %54, %54 : vector<8x128xf32>
    %cst_21 = arith.constant dense<0.000000e+00> : vector<1x128xf32>
    %58 = tpu.matmul %0, %57, %cst_21 {dimension_numbers = #tpu.dot_dimension_numbers<[1], [0], [0], [1], [0, 0, 1, 1], [], []>} : vector<1x8xf32>, vector<8x128xf32>, vector<1x128xf32> -> vector<1x128xf32>
    %cst_22 = arith.constant 1.250000e-01 : f32
    %59 = vector.broadcast %cst_22 : f32 to vector<1x128xf32>
    %60 = arith.mulf %56, %59 : vector<1x128xf32>
    %cst_23 = arith.constant 1.250000e-01 : f32
    %61 = vector.broadcast %cst_23 : f32 to vector<1x128xf32>
    %62 = arith.mulf %58, %61 : vector<1x128xf32>
    %63 = arith.mulf %60, %60 : vector<1x128xf32>
    %64 = arith.subf %62, %63 : vector<1x128xf32>
    %cst_24 = arith.constant 0.000000e+00 : f32
    %65 = vector.broadcast %cst_24 : f32 to vector<1x128xf32>
    %66 = arith.maximumf %64, %65 : vector<1x128xf32>
    %67 = vector.extract_strided_slice %55 {offsets = [0, 0], sizes = [1, 128], strides = [1, 1]} : vector<2x128xf32> to vector<1x128xf32>
    %cst_25 = arith.constant 9.99999974E-6 : f32
    %68 = vector.broadcast %cst_25 : f32 to vector<1x128xf32>
    %69 = arith.addf %66, %68 : vector<1x128xf32>
    %70 = math.rsqrt %69 : vector<1x128xf32>
    %71 = arith.mulf %67, %70 : vector<1x128xf32>
    %72 = vector.extract_strided_slice %55 {offsets = [1, 0], sizes = [1, 128], strides = [1, 1]} : vector<2x128xf32> to vector<1x128xf32>
    %73 = arith.mulf %60, %71 : vector<1x128xf32>
    %74 = arith.subf %72, %73 : vector<1x128xf32>
    %75 = vector.broadcast %71 : vector<1x128xf32> to vector<8x128xf32>
    %76 = arith.mulf %54, %75 : vector<8x128xf32>
    %77 = vector.broadcast %74 : vector<1x128xf32> to vector<8x128xf32>
    %78 = arith.addf %76, %77 : vector<8x128xf32>
    %cst_26 = arith.constant 0.000000e+00 : f32
    %79 = vector.broadcast %cst_26 : f32 to vector<8x128xf32>
    %80 = arith.maximumf %78, %79 : vector<8x128xf32>
    %81 = arith.truncf %80 : vector<8x128xf32> to vector<8x128xbf16>
    %c0_27 = arith.constant 0 : index
    %c0_28 = arith.constant 0 : index
    %82 = vector.load %arg5[%c0_27, %c0_28] : memref<128x128xbf16, #tpu.memory_space<vmem>>, vector<128x128xbf16>
    %cst_29 = arith.constant dense<0.000000e+00> : vector<8x128xf32>
    %83 = tpu.matmul %81, %82, %cst_29 {dimension_numbers = #tpu.dot_dimension_numbers<[1], [0], [0], [1], [0, 0, 1, 1], [], []>} : vector<8x128xbf16>, vector<128x128xbf16>, vector<8x128xf32> -> vector<8x128xf32>
    %c0_30 = arith.constant 0 : index
    %c0_31 = arith.constant 0 : index
    %84 = vector.load %arg6[%c0_30, %c0_31] : memref<2x128xf32, #tpu.memory_space<vmem>>, vector<2x128xf32>
    %cst_32 = arith.constant dense<0.000000e+00> : vector<1x128xf32>
    %85 = tpu.matmul %0, %83, %cst_32 {dimension_numbers = #tpu.dot_dimension_numbers<[1], [0], [0], [1], [0, 0, 1, 1], [], []>} : vector<1x8xf32>, vector<8x128xf32>, vector<1x128xf32> -> vector<1x128xf32>
    %86 = arith.mulf %83, %83 : vector<8x128xf32>
    %cst_33 = arith.constant dense<0.000000e+00> : vector<1x128xf32>
    %87 = tpu.matmul %0, %86, %cst_33 {dimension_numbers = #tpu.dot_dimension_numbers<[1], [0], [0], [1], [0, 0, 1, 1], [], []>} : vector<1x8xf32>, vector<8x128xf32>, vector<1x128xf32> -> vector<1x128xf32>
    %cst_34 = arith.constant 1.250000e-01 : f32
    %88 = vector.broadcast %cst_34 : f32 to vector<1x128xf32>
    %89 = arith.mulf %85, %88 : vector<1x128xf32>
    %cst_35 = arith.constant 1.250000e-01 : f32
    %90 = vector.broadcast %cst_35 : f32 to vector<1x128xf32>
    %91 = arith.mulf %87, %90 : vector<1x128xf32>
    %92 = arith.mulf %89, %89 : vector<1x128xf32>
    %93 = arith.subf %91, %92 : vector<1x128xf32>
    %cst_36 = arith.constant 0.000000e+00 : f32
    %94 = vector.broadcast %cst_36 : f32 to vector<1x128xf32>
    %95 = arith.maximumf %93, %94 : vector<1x128xf32>
    %96 = vector.extract_strided_slice %84 {offsets = [0, 0], sizes = [1, 128], strides = [1, 1]} : vector<2x128xf32> to vector<1x128xf32>
    %cst_37 = arith.constant 9.99999974E-6 : f32
    %97 = vector.broadcast %cst_37 : f32 to vector<1x128xf32>
    %98 = arith.addf %95, %97 : vector<1x128xf32>
    %99 = math.rsqrt %98 : vector<1x128xf32>
    %100 = arith.mulf %96, %99 : vector<1x128xf32>
    %101 = vector.extract_strided_slice %84 {offsets = [1, 0], sizes = [1, 128], strides = [1, 1]} : vector<2x128xf32> to vector<1x128xf32>
    %102 = arith.mulf %89, %100 : vector<1x128xf32>
    %103 = arith.subf %101, %102 : vector<1x128xf32>
    %104 = vector.broadcast %100 : vector<1x128xf32> to vector<8x128xf32>
    %105 = arith.mulf %83, %104 : vector<8x128xf32>
    %106 = vector.broadcast %103 : vector<1x128xf32> to vector<8x128xf32>
    %107 = arith.addf %105, %106 : vector<8x128xf32>
    %cst_38 = arith.constant 0.000000e+00 : f32
    %108 = vector.broadcast %cst_38 : f32 to vector<8x128xf32>
    %109 = arith.maximumf %107, %108 : vector<8x128xf32>
    %c0_39 = arith.constant 0 : index
    %c0_40 = arith.constant 0 : index
    %110 = vector.load %arg7[%c0_39, %c0_40] : memref<8x128xf32, #tpu.memory_space<vmem>>, vector<8x128xf32>
    tpu.vector_store %arg7[%c0_39, %c0_40], %109 {strides = array<i32>} : memref<8x128xf32, #tpu.memory_space<vmem>>, vector<8x128xf32>,
    return
  }
}

</mosaic_0001>

<bundles_post_ra>
// kernel: tpu_custom_call.1
= control target key start
LH: loop header
LB: loop body
LE: loop exit
PB: predicated region body
PF: predicated region fallthrough
CT: control target
= control target key end

     0   :  { %12 = vsyncpa [#allocation3], 0  ;;  %s2492_s0 = inlined_call_operand.hbm [shape: bf16[8,11], index: 0, kind: input, shape index: {}]   ;;  %s2493_s1 = inlined_call_operand.hbm [shape: bf16[256,384], index: 1, kind: input, shape index: {}]   ;;  %s2494_s2 = inlined_call_operand.vmem [shape: f32[2,384], index: 2, kind: input, shape index: {}]   ;;  %s2495_s3 = inlined_call_operand.hbm [shape: bf16[384,128], index: 3, kind: input, shape index: {}]   ;;  %s2496_s4 = inlined_call_operand.vmem [shape: f32[2,128], index: 4, kind: input, shape index: {}]   ;;  %s2497_s5 = inlined_call_operand.hbm [shape: bf16[128,128], index: 5, kind: input, shape index: {}]   ;;  %s2498_s6 = inlined_call_operand.vmem [shape: f32[2,128], index: 6, kind: input, shape index: {}]   ;;  %s2499_s7 = inlined_call_operand.hbm [shape: f32[8,128], index: 7, kind: output, shape index: {}]  }
   0x1   :  { %13 = vsyncpa [#allocation6], 0 }
   0x2   :  { %14 = vsyncpa [#allocation9], 0 }
   0x3   :  { %15 = vsyncpa [#allocation4], 0  ;;  %s2221_s24 = smov [#allocation5]   ;;  %s2103_s28 = scalar_lea.hbm %s2493_s1, 6144 }
   0x4   :  { %s31_s25 = sshll.u32 %s2221_s24, 4  ;;  %p2104_p0 = scmp.ne.s32.totalorder %s2493_s1, %s2103_s28  ;;  %s32_s25 = int_to_ptr.vmem [resolvable:$true] %s31_s25 }
   0x5   :  { %p2107_p1 = scmp.lt.u32.totalorder %s2103_s28, %s2493_s1 }
   0x7   :  { %p2109_p2 = pnand %p2107_p1, %p2104_p0 }
   0x9   :  { %2112 = shalt.err (!%p2109_p2)
}
   0xa   :  { %s2113_s10 = scalar_lea.vmem %s32_s25, 6144  ;;  %p2118_p4 = scmp.lt.s32.totalorder %s32_s25, %s32_s25 }
   0xb   :  { %p2114_p3 = scmp.ne.s32.totalorder %s32_s25, %s2113_s10  ;;  %p2119_p5 = scmp.lt.s32.totalorder %s2113_s10, %s2113_s10 }
   0xd   :  { %p2120_p6 = por %p2119_p5, %p2118_p4 }
   0xf   :  { %p2121_p7 = pnand %p2120_p6, %p2114_p3 }
  0x11   :  { %2124 = shalt.err (!%p2121_p7)
}
  0x12   :  { %s2222_s11 = smov 192   ;;  %s2223_s12 = smov 12  }
  0x13   :  { %37 = dma.hbm_to_vmem [thread:$0]  %s2493_s1, 6144, %s32_s25, [#allocation6], %s2222_s11, %s2222_s11, %s2223_s12  }
  0x14   :  { %s2224_s15 = smov [#allocation2]   ;;  %s2225_s17 = smov [#allocation7]  }
  0x15   :  { %s22_s16 = sshll.u32 %s2224_s15, 4  ;;  %s45_s18 = sshll.u32 %s2225_s17, 4  ;;  %s23_s16 = int_to_ptr.vmem [resolvable:$true] %s22_s16  ;;  %s46_s18 = int_to_ptr.vmem [resolvable:$true] %s45_s18 }
  0x16   :  { %s2125_s21 = scalar_lea.hbm %s2492_s0, 64 }
  0x17   :  { %p2126_p8 = scmp.ne.s32.totalorder %s2492_s0, %s2125_s21  ;;  %p2129_p9 = scmp.lt.u32.totalorder %s2125_s21, %s2492_s0 }
  0x19   :  { %p2131_p10 = pnand %p2129_p9, %p2126_p8 }
  0x1b   :  { %2134 = shalt.err (!%p2131_p10)
}
  0x1c   :  { %s2135_s1 = scalar_lea.vmem %s23_s16, 64  ;;  %p2140_p12 = scmp.lt.s32.totalorder %s23_s16, %s23_s16 }
  0x1d   :  { %p2136_p11 = scmp.ne.s32.totalorder %s23_s16, %s2135_s1  ;;  %p2141_p13 = scmp.lt.s32.totalorder %s2135_s1, %s2135_s1 }
  0x1f   :  { %p2142_p0 = por %p2141_p13, %p2140_p12 }
  0x21   :  { %p2143_p1 = pnand %p2142_p0, %p2136_p11 }
  0x23   :  { %2146 = shalt.err (!%p2143_p1)
}
  0x24   :  { %25 = dma.hbm_to_vmem [thread:$0]  %s2492_s0, 64, %s23_s16, [#allocation3]  }
  0x25   :  { %s2147_s30 = scalar_lea.hbm %s2495_s3, 3072 }
  0x26   :  { %p2148_p2 = scmp.ne.s32.totalorder %s2495_s3, %s2147_s30  ;;  %p2151_p3 = scmp.lt.u32.totalorder %s2147_s30, %s2495_s3 }
  0x28   :  { %p2153_p4 = pnand %p2151_p3, %p2148_p2 }
  0x2a   :  { %2156 = shalt.err (!%p2153_p4)
}
  0x2b   :  { %s2157_s12 = scalar_lea.vmem %s46_s18, 3072  ;;  %p2162_p6 = scmp.lt.s32.totalorder %s46_s18, %s46_s18 }
  0x2c   :  { %p2158_p5 = scmp.ne.s32.totalorder %s46_s18, %s2157_s12  ;;  %p2163_p7 = scmp.lt.s32.totalorder %s2157_s12, %s2157_s12 }
  0x2e   :  { %p2164_p8 = por %p2163_p7, %p2162_p6 }
  0x30   :  { %p2165_p9 = pnand %p2164_p8, %p2158_p5 }
  0x32   :  { %2168 = shalt.err (!%p2165_p9)
}
  0x33   :  { %s2226_s0 = smov 64   ;;  %s2227_s13 = smov 4  }
  0x34   :  { %51 = dma.hbm_to_vmem [thread:$0]  %s2495_s3, 3072, %s46_s18, [#allocation6], %s2226_s0, %s2226_s0, %s2227_s13  }
  0x35   :  { %s2228_s16 = smov [#allocation8]   ;;  %s2169_s21 = scalar_lea.hbm %s2497_s5, 1024 }
  0x36   :  { %s59_s17 = sshll.u32 %s2228_s16, 4  ;;  %p2170_p10 = scmp.ne.s32.totalorder %s2497_s5, %s2169_s21  ;;  %s60_s17 = int_to_ptr.vmem [resolvable:$true] %s59_s17 }
  0x37   :  { %p2173_p11 = scmp.lt.u32.totalorder %s2169_s21, %s2497_s5 }
  0x39   :  { %p2175_p12 = pnand %p2173_p11, %p2170_p10 }
  0x3b   :  { %2178 = shalt.err (!%p2175_p12)
}
  0x3c   :  { %s2179_s1 = scalar_lea.vmem %s60_s17, 1024  ;;  %p2184_p0 = scmp.lt.s32.totalorder %s60_s17, %s60_s17 }
  0x3d   :  { %p2180_p13 = scmp.ne.s32.totalorder %s60_s17, %s2179_s1  ;;  %p2185_p1 = scmp.lt.s32.totalorder %s2179_s1, %s2179_s1 }
  0x3f   :  { %p2186_p2 = por %p2185_p1, %p2184_p0 }
  0x41   :  { %p2187_p3 = pnand %p2186_p2, %p2180_p13 }
  0x43   :  { %2190 = shalt.err (!%p2187_p3)
}
  0x44   :  { %65 = dma.hbm_to_vmem [thread:$0]  %s2497_s5, 1024, %s60_s17, [#allocation9], %s2226_s0, %s2226_s0, %s2227_s13  }
  0x45   :  { %2213 = dma.done.wait [#allocation3], 64  }
  0x46   :  { %2214 = vsyncadd [#allocation3], 4294967232 }
  0x47   :  { %2215 = dma.done.wait [#allocation6], 9216  }
  0x48   :  { %2216 = vsyncadd [#allocation6], 4294958080 }
  0x49   :  { %2217 = dma.done.wait [#allocation9], 1024  }
  0x4a   :  { %2218 = vsyncadd [#allocation9], 4294966272  ;;  %v81_v0 = vlaneseq  ;;  %v2229_v3 = vmov 0   ;;  %vm120_vm0 = vcmask 1044480   ;;  %v1997_v15 = vld [vmem:[#allocation5 + $0x4] ss:$12 sps:$4 sm:$0xff]  }
  0x4b   :  { %162 = vmatprep.mubr.bf16.mxu0 %v2229_v3  ;;  %v1999_v16 = vld [vmem:[#allocation5] ss:$12 sps:$4 sm:$0xff]   ;;  %vm121_vm6 = vcmask 1045504   ;;  %v2230_v17 = vmov 65535   ;;  %v2000_v20 = vld [vmem:[#allocation5 + $0x1c] ss:$12 sps:$4 sm:$0xff]   ;;  %501 = vmatprep.subr.bf16.mxu1 %v1997_v15 }
  0x4c   :  { %v2325_v1 = vand.u32 127, %v81_v0  ;;  %v2327_v2 = vshrl.u32 %v81_v0, 7  ;;  %v122_v18 = vsel %vm120_vm0, 4294967295, %v2230_v17  ;;  %v2231_v21 = vmov 0.0   ;;  %502 = vmatpush1.bf16.msra.mxu1 %v1999_v16  ;;  %v2002_v24 = vld [vmem:[#allocation5 + $0x18] ss:$12 sps:$4 sm:$0xff]  }
  0x4d   :  { %v123_v26 = vsel %vm121_vm6, %v122_v18, 0  ;;  %503 = vmatprep.subr.bf16.mxu1 %v2000_v20  ;;  %v2003_v27 = vld [vmem:[#allocation5 + $0x34] ss:$12 sps:$4 sm:$0xff]   ;;  %v2005_v32 = vld [vmem:[#allocation5 + $0x30] ss:$12 sps:$4 sm:$0xff]   ;;  %vm116_vm14 = vcmask 89088  }
  0x4e   :  { %v2330_v4 = vadd.s32 128, %v2325_v1  ;;  %v86_v5 = vadd.s32 8, %v2327_v2  ;;  %v87_v6 = vmul.u32 20, %v2327_v2  ;;  %v93_v7 = vadd.s32 1, %v2327_v2  ;;  %v2006_v34 = vld [vmem:[#allocation5 + $0x4c] ss:$12 sps:$4 sm:$0xff]  }
  0x4f   :  { %v115_v35 = vld [vmem:[#allocation2] sm:$0xf]  ;;  %v2008_v36 = vld [vmem:[#allocation5 + $0x48] ss:$12 sps:$4 sm:$0xff]   ;;  %v2009_v37 = vld [vmem:[#allocation5 + $0x64] ss:$12 sps:$4 sm:$0xff]   ;;  %v171_v16 = vcvt.s32.f32 %v2325_v1 }
  0x50   :  { %v88_v8 = vmul.u32 20, %v86_v5  ;;  %vm2336_vm1 = vcmp.ge.s32.totalorder %v2330_v4, %v87_v6  ;;  %v94_v10 = vadd.s32 1, %v86_v5  ;;  %v95_v11 = vmul.u32 20, %v93_v7  ;;  %504 = vmatpush1.bf16.msra.mxu1 %v2002_v24  ;;  %v2023_v38 = vld [vmem:[#allocation5 + $0xc8] ss:$12 sps:$4 sm:$0xff]   ;;  %s2236_s29 = smov [#allocation10]  }
  0x51   :  { %vm2341_vm2 = vcmp.ge.s32.totalorder %v2325_v1, %v87_v6  ;;  %505 = vmatprep.subr.bf16.mxu1 %v2003_v27  ;;  %v2025_v39 = vld [vmem:[#allocation5 + $0x8] ss:$12 sps:$4 sm:$0xff]   ;;  %v2011_v40 = vld [vmem:[#allocation5 + $0x60] ss:$12 sps:$4 sm:$0xff]   ;;  %v2014_v44 = vld [vmem:[#allocation5 + $0x78] ss:$12 sps:$4 sm:$0xff]   ;;  %v172_v17 = vcvt.s32.f32 %v2330_v4 }
  0x52   :  { %vm2346_vm3 = vcmp.ge.s32.totalorder %v2330_v4, %v88_v8  ;;  %v96_v14 = vmul.u32 20, %v94_v10  ;;  %vm98_vm4 = vcmp.lt.s32.totalorder %v2330_v4, %v95_v11  ;;  %vm2354_vm7 = vcmp.ge.s32.totalorder %v2325_v1, %v88_v8  ;;  %v2012_v41 = vld [vmem:[#allocation5 + $0x7c] ss:$12 sps:$4 sm:$0xff]   ;;  %v2028_v42 = vld [vmem:[#allocation5 + $0xe0] ss:$12 sps:$4 sm:$0xff]   ;;  %s1723_s30 = sshll.u32 %s2236_s29, 4  ;;  %s1724_s30 = int_to_ptr.vmem [resolvable:$true] %s1723_s30 }
  0x53   :  { %vm102_vm5 = vmand %vm2336_vm1, %vm98_vm4  ;;  %vm97_vm8 = vcmp.lt.s32.totalorder %v2325_v1, %v95_v11  ;;  %v2030_v43 = vld [vmem:[#allocation5 + $0x20] ss:$12 sps:$4 sm:$0xff]   ;;  %v2033_v45 = vld [vmem:[#allocation5 + $0xf8] ss:$12 sps:$4 sm:$0xff]   ;;  %vm583_vm4 = vcmask 64512   ;;  %s2191_s8 = scalar_lea.vmem %s1724_s30, 128  ;;  %p2196_p5 = scmp.lt.s32.totalorder %s1724_s30, %s1724_s30 }
  0x54   :  { %vm100_vm9 = vcmp.lt.s32.totalorder %v2330_v4, %v96_v14  ;;  %v1735_v22 = vsel %vm102_vm5, 1.0, %v2231_v21  ;;  %vm99_vm10 = vcmp.lt.s32.totalorder %v2325_v1, %v96_v14  ;;  %vm101_vm11 = vmand %vm2341_vm2, %vm97_vm8  ;;  %506 = vmatpush1.bf16.msra.mxu1 %v2005_v32  ;;  %v2015_v46 = vld [vmem:[#allocation5 + $0x94] ss:$12 sps:$4 sm:$0xff]   ;;  %v2035_v47 = vld [vmem:[#allocation5 + $0x38] ss:$12 sps:$4 sm:$0xff]   ;;  %v2234_v32 = vmov 1.0   ;;  %p2192_p4 = scmp.ne.s32.totalorder %s1724_s30, %s2191_s8  ;;  %p2197_p6 = scmp.lt.s32.totalorder %s2191_s8, %s2191_s8 }
  0x55   :  { %vm104_vm12 = vmand %vm2346_vm3, %vm100_vm9  ;;  %v1734_v23 = vsel %vm101_vm11, 1.0, %v2231_v21  ;;  %507 = vmatprep.subr.bf16.mxu1 %v2006_v34  ;;  %v2017_v48 = vld [vmem:[#allocation5 + $0x90] ss:$12 sps:$4 sm:$0xff]   ;;  %v2018_v49 = vld [vmem:[#allocation5 + $0xac] ss:$12 sps:$4 sm:$0xff]   ;;  %vm2233_vm3 = vmmov 0  }
  0x56   :  { %v1737_v25 = vsel %vm104_vm12, 1.0, %v2231_v21  ;;  %vm103_vm13 = vmand %vm2354_vm7, %vm99_vm10  ;;  %v2038_v50 = vld [vmem:[#allocation5 + $0x110] ss:$12 sps:$4 sm:$0xff]   ;;  %v2020_v52 = vld [vmem:[#allocation5 + $0xa8] ss:$12 sps:$4 sm:$0xff]   ;;  %p2198_p7 = por %p2197_p6, %p2196_p5 }
  0x57   :  { %v114_v28 = vpack.c.bf16 %v1737_v25, %v1735_v22  ;;  %v1736_v29 = vsel %vm103_vm13, 1.0, %v2231_v21  ;;  %v2040_v51 = vld [vmem:[#allocation5 + $0x50] ss:$12 sps:$4 sm:$0xff]   ;;  %v2043_v53 = vld [vmem:[#allocation5 + $0x128] ss:$12 sps:$4 sm:$0xff]  }
  0x58   :  { %v113_v30 = vpack.c.bf16 %v1736_v29, %v1734_v23  ;;  %508 = vmatpush1.bf16.msra.mxu1 %v2008_v36  ;;  %v2021_v54 = vld [vmem:[#allocation5 + $0xc4] ss:$12 sps:$4 sm:$0xff]   ;;  %v2045_v55 = vld [vmem:[#allocation5 + $0x68] ss:$12 sps:$4 sm:$0xff]   ;;  %v2048_v56 = vld [vmem:[#allocation5 + $0x140] ss:$12 sps:$4 sm:$0xff]   ;;  %p2199_p8 = pnand %p2198_p7, %p2192_p4 }
  0x59   :  { %v128_v31 = vand.u32 %v123_v26, %v114_v28  ;;  %509 = vmatprep.subr.bf16.mxu1 %v2009_v37  ;;  %v2024_v57 = vld [vmem:[#allocation5 + $0xc0] ss:$12 sps:$4 sm:$0xff]   ;;  %v2026_v58 = vld [vmem:[#allocation5 + $0xdc] ss:$12 sps:$4 sm:$0xff]   ;;  %v2029_v60 = vld [vmem:[#allocation5 + $0xd8] ss:$12 sps:$4 sm:$0xff]  }
  0x5a   :  { %v125_v33 = vand.u32 %v123_v26, %v113_v30  ;;  %v2050_v59 = vld [vmem:[#allocation5 + $0x80] ss:$12 sps:$4 sm:$0xff]   ;;  %v2053_v61 = vld [vmem:[#allocation5 + $0x158] ss:$12 sps:$4 sm:$0xff]   ;;  %v2034_v0 = vld [vmem:[#allocation5 + $0xf0] ss:$12 sps:$4 sm:$0xff]  }
  0x5b   :  { %130 = vmatprep.subr.bf16.mxu0 %v128_v31  ;;  %v2031_v62 = vld [vmem:[#allocation5 + $0xf4] ss:$12 sps:$4 sm:$0xff]   ;;  %v2055_v63 = vld [vmem:[#allocation5 + $0x98] ss:$12 sps:$4 sm:$0xff]   ;;  %v2046_v8 = vld [vmem:[#allocation5 + $0x13c] ss:$12 sps:$4 sm:$0xff]  }
  0x5c   :  { %131 = vmatpush1.bf16.msra.mxu0 %v125_v33  ;;  %510 = vmatpush1.bf16.msra.mxu1 %v2011_v40  ;;  %v2036_v3 = vld [vmem:[#allocation5 + $0x10c] ss:$12 sps:$4 sm:$0xff]   ;;  %v2039_v5 = vld [vmem:[#allocation5 + $0x108] ss:$12 sps:$4 sm:$0xff]   ;;  %v2041_v6 = vld [vmem:[#allocation5 + $0x124] ss:$12 sps:$4 sm:$0xff]  }
  0x5d   :  { %1837 = vmatprep.subr.bf16.mxu0 %v2023_v38  ;;  %511 = vmatprep.subr.bf16.mxu1 %v2012_v41  ;;  %v2044_v7 = vld [vmem:[#allocation5 + $0x120] ss:$12 sps:$4 sm:$0xff]   ;;  %v2049_v9 = vld [vmem:[#allocation5 + $0x138] ss:$12 sps:$4 sm:$0xff]   ;;  %v2054_v11 = vld [vmem:[#allocation5 + $0x150] ss:$12 sps:$4 sm:$0xff]  }
  0x5e   :  { %v2051_v10 = vld [vmem:[#allocation5 + $0x154] ss:$12 sps:$4 sm:$0xff]   ;;  %v2056_v12 = vld [vmem:[#allocation5 + $0x16c] ss:$12 sps:$4 sm:$0xff]   ;;  %v2058_v13 = vld [vmem:[#allocation5 + $0x170] ss:$12 sps:$4 sm:$0xff]  }
  0x5f   :  { %1738 = vmatmul.mubr.msk.bf16.vlgmr.msra.gmra.mrb[0].mxu0 %vm116_vm14, %v115_v35  ;;  %v2059_v14 = vld [vmem:[#allocation5 + $0x168] ss:$12 sps:$4 sm:$0xff]   ;;  %v2060_v15 = vld [vmem:[#allocation5 + $0xb0] ss:$12 sps:$4 sm:$0xff]   ;;  %v2232_v23 = vmov 1.0|1.0  }
  0x60   :  { %1838 = vmatpush3.bf16.msra.mxu0 %v2025_v39  ;;  %512 = vmatpush1.bf16.msra.mxu1 %v2014_v44  ;;  %v2061_v35 = vld [vmem:[#allocation7 + $0x40] sm:$0xff]   ;;  %v2064_v38 = vld [vmem:[#allocation7 + $0x48] sm:$0xff]   ;;  %v2067_v41 = vld [vmem:[#allocation7 + $0x50] sm:$0xff]  }
  0x61   :  { %1839 = vmatprep.subr.bf16.mxu0 %v2028_v42  ;;  %513 = vmatprep.subr.bf16.mxu1 %v2015_v46  ;;  %v2062_v36 = vld [vmem:[#allocation7 + $0x80] sm:$0xff]   ;;  %v2065_v39 = vld [vmem:[#allocation7 + $0x88] sm:$0xff]   ;;  %v2068_v42 = vld [vmem:[#allocation7 + $0x90] sm:$0xff]  }
  0x62   :  { %v2063_v37 = vld [vmem:[#allocation7] sm:$0xff]   ;;  %v2066_v40 = vld [vmem:[#allocation7 + $0x8] sm:$0xff]   ;;  %v2070_v44 = vld [vmem:[#allocation7 + $0x58] sm:$0xff]  }
  0x63   :  { %v2072_v46 = vld [vmem:[#allocation7 + $0x18] sm:$0xff]  }
  0x64   :  { %1840 = vmatpush3.bf16.msra.mxu0 %v2030_v43  ;;  %514 = vmatpush1.bf16.msra.mxu1 %v2017_v48  ;;  %v2069_v43 = vld [vmem:[#allocation7 + $0x10] sm:$0xff]   ;;  %v2074_v48 = vld [vmem:[#allocation7 + $0xa0] sm:$0xff]  }
  0x65   :  { %1841 = vmatprep.subr.bf16.mxu0 %v2033_v45  ;;  %515 = vmatprep.subr.bf16.mxu1 %v2018_v49  ;;  %v2071_v45 = vld [vmem:[#allocation7 + $0x98] sm:$0xff]   ;;  %v2075_v49 = vld [vmem:[#allocation7 + $0x20] sm:$0xff]  }
  0x68   :  { %1842 = vmatpush3.bf16.msra.mxu0 %v2035_v47  ;;  %516 = vmatpush1.bf16.msra.mxu1 %v2020_v52  ;;  %v2073_v47 = vld [vmem:[#allocation7 + $0x60] sm:$0xff]   ;;  %v2078_v52 = vld [vmem:[#allocation7 + $0x28] sm:$0xff]  }
  0x69   :  { %1843 = vmatprep.subr.bf16.mxu0 %v2038_v50  ;;  %517 = vmatprep.subr.bf16.mxu1 %v2021_v54  ;;  %v2076_v50 = vld [vmem:[#allocation7 + $0x68] sm:$0xff]   ;;  %v2080_v54 = vld [vmem:[#allocation7 + $0xb0] sm:$0xff]  }
  0x6c   :  { %1844 = vmatpush3.bf16.msra.mxu0 %v2040_v51  ;;  %518 = vmatpush1.bf16.msra.mxu1 %v2024_v57  ;;  %v2077_v51 = vld [vmem:[#allocation7 + $0xa8] sm:$0xff]   ;;  %v2083_v57 = vld [vmem:[#allocation7 + $0xb8] sm:$0xff]  }
  0x6d   :  { %1845 = vmatprep.subr.bf16.mxu0 %v2043_v53  ;;  %519 = vmatprep.subr.bf16.mxu1 %v2026_v58  ;;  %v2079_v53 = vld [vmem:[#allocation7 + $0x70] sm:$0xff]   ;;  %v2084_v58 = vld [vmem:[#allocation7 + $0x38] sm:$0xff]  }
  0x70   :  { %1846 = vmatpush3.bf16.msra.mxu0 %v2045_v55  ;;  %520 = vmatpush1.bf16.msra.mxu1 %v2029_v60  ;;  %v2081_v55 = vld [vmem:[#allocation7 + $0x30] sm:$0xff]  }
  0x71   :  { %1847 = vmatprep.subr.bf16.mxu0 %v2048_v56  ;;  %521 = vmatprep.subr.bf16.mxu1 %v2031_v62  ;;  %v2082_v56 = vld [vmem:[#allocation7 + $0x78] sm:$0xff]  }
  0x74   :  { %1848 = vmatpush3.bf16.msra.mxu0 %v2050_v59  ;;  %522 = vmatpush1.bf16.msra.mxu1 %v2034_v0 }
  0x75   :  { %1849 = vmatprep.subr.bf16.mxu0 %v2053_v61  ;;  %523 = vmatprep.subr.bf16.mxu1 %v2036_v3 }
  0x78   :  { %1850 = vmatpush3.bf16.msra.mxu0 %v2055_v63  ;;  %524 = vmatpush1.bf16.msra.mxu1 %v2039_v5 }
  0x79   :  { %525 = vmatprep.subr.bf16.mxu1 %v2041_v6  ;;  %1851 = vmatprep.subr.bf16.mxu0 %v2058_v13 }
  0x7c   :  { %526 = vmatpush1.bf16.msra.mxu1 %v2044_v7  ;;  %1852 = vmatpush3.bf16.msra.mxu0 %v2060_v15 }
  0x7d   :  { %527 = vmatprep.subr.bf16.mxu1 %v2046_v8 }
  0x80   :  { %528 = vmatpush1.bf16.msra.mxu1 %v2049_v9 }
  0x81   :  { %529 = vmatprep.subr.bf16.mxu1 %v2051_v10 }
  0x84   :  { %530 = vmatpush1.bf16.msra.mxu1 %v2054_v11 }
  0x85   :  { %531 = vmatprep.subr.bf16.mxu1 %v2056_v12 }
  0x88   :  { %532 = vmatpush1.bf16.msra.mxu1 %v2059_v14 }
  0x89   :  { %1921 = vmatprep.subr.bf16.mxu1 %v2231_v21 }
 0x132   :  { %v164_v18 = vpop.f32.mrb[0].mxu0 }
 0x133   :  { %vm173_vm15 = vcmp.eq.f32.partialorder %v164_v18, %v171_v16  ;;  %v166_v19 = vpop.f32.mrb[1].mxu0 }
 0x134   :  { %vm174_vm0 = vcmp.eq.f32.partialorder %v166_v19, %v172_v17  ;;  %v168_v20 = vpop.f32.mrb[2].mxu0  ;;  %vm1791_vm2 = vmpackc.low %vm173_vm15, %vm173_vm15 }
 0x135   :  { %v169_v22 = vpop.f32.mrb[3].mxu0  ;;  %vm1789_vm1 = vmpackc.low %vm174_vm0, %vm174_vm0 }
 0x136   :  { %1790 = vmatprep.mubr.msk.bf16.mxu1 %vm1789_vm1, %v2232_v23  ;;  %1794 = vmatprep.mubr.msk.bf16.mxu0 %vm1789_vm1, %v2232_v23 }
 0x137   :  { %1792 = vmatmul.mubr.msk.bf16.vlgmr.msra.gmra.mrb[0].mxu1 %vm1791_vm2, %v2232_v23  ;;  %1796 = vmatmul.mubr.msk.bf16.vlgmr.msra.gmra.mrb[4].mxu0 %vm1791_vm2, %v2232_v23 }
 0x138   :  { %651 = vmatprep.mubr.f32.mxu0 %v2231_v21  ;;  %1937 = vmatprep.mubr.msk.bf16.mxu1 %vm2233_vm3, %v2231_v21 }
 0x139   :  { %1922 = vmatpush3.bf16.msra.mxu1 %v2062_v36 }
 0x13a   :  { %1923 = vmatprep.subr.bf16.mxu1 %v2231_v21 }
 0x13d   :  { %1924 = vmatpush3.bf16.msra.mxu1 %v2065_v39  ;;  %v2422_v39 = vsub.s32 0, %v2327_v2 }
 0x13e   :  { %1925 = vmatprep.subr.bf16.mxu1 %v2231_v21 }
 0x141   :  { %1926 = vmatpush3.bf16.msra.mxu1 %v2068_v42 }
 0x142   :  { %1927 = vmatprep.subr.bf16.mxu1 %v2231_v21 }
 0x145   :  { %1928 = vmatpush3.bf16.msra.mxu1 %v2071_v45 }
 0x146   :  { %1929 = vmatprep.subr.bf16.mxu1 %v2231_v21 }
 0x149   :  { %1930 = vmatpush3.bf16.msra.mxu1 %v2074_v48 }
 0x14a   :  { %1931 = vmatprep.subr.bf16.mxu1 %v2231_v21 }
 0x14d   :  { %1932 = vmatpush3.bf16.msra.mxu1 %v2077_v51 }
 0x14e   :  { %1933 = vmatprep.subr.bf16.mxu1 %v2231_v21 }
 0x151   :  { %1934 = vmatpush3.bf16.msra.mxu1 %v2080_v54 }
 0x152   :  { %1935 = vmatprep.subr.bf16.mxu1 %v2231_v21 }
 0x155   :  { %1936 = vmatpush3.bf16.msra.mxu1 %v2083_v57 }
 0x156   :  { %1951 = vmatprep.subr.bf16.mxu1 %v2231_v21 }
 0x20a   :  { %v2378_v1 = vpop.f32.mrb[0].mxu1  ;;  %v1853_v4 = vpop.f32.mrb[4].mxu0 }
 0x20b   :  { %v2380_v24 = vpop.f32.mrb[1].mxu1  ;;  %v1854_v25 = vpop.f32.mrb[5].mxu0  ;;  %v728_v33 = vmul.f32 %v2378_v1, %v2378_v1 }
 0x20c   :  { %v2382_v26 = vadd.f32 %v1854_v25, %v1853_v4  ;;  %v539_v27 = vpop.f32.mrb[2].mxu1  ;;  %v1856_v28 = vpop.f32.mrb[6].mxu0  ;;  %587 = vmatprep.subr.mxu0 %v2380_v24  ;;  %v729_v31 = vmul.f32 %v2380_v24, %v2380_v24  ;;  %v2235_v4 = vmov 1983009808  }
 0x20d   :  { %v540_v29 = vpop.f32.mrb[3].mxu1  ;;  %v1857_v30 = vpop.f32.mrb[7].mxu0  ;;  %588 = vmatpush1.msra.mxu0 %v2378_v1  ;;  %v898_v25 = vunpack.c.l.s4 %v2235_v4 }
 0x20e   :  { %1797 = vmatmul.mubr.msk.f32.vlgmr.msra.gmra.mrb[8].mxu0 %vm583_vm4, %v2234_v32  ;;  %1911 = vmatprep.subr.mxu0 %v2231_v21  ;;  %v730_v34 = vmul.f32 %v2382_v26, %v2382_v26 }
 0x20f   :  { %1912 = vmatpush3.msra.mxu0 %v2382_v26  ;;  %1913 = vmatprep.mubr.msk.f32.mxu0 %vm2233_vm3, %v2231_v21  ;;  %v899_v28 = vunpack.c.0.s8 %v898_v25 }
 0x210   :  { %731 = vmatprep.subr.mxu0 %v729_v31 }
 0x211   :  { %v902_v30 = vsub.s32 %v899_v28, %v2327_v2  ;;  %v2086_v28 = vld [vmem:[#allocation8 + $0x8] sm:$0xff]  }
 0x212   :  { %1914 = vmatmul.mubr.msk.f32.vlgmr.msra.gmra.mrb[10].mxu0 %vm583_vm4, %v2234_v32 }
 0x213   :  { %732 = vmatpush1.msra.mxu0 %v728_v33  ;;  %795 = vmatprep.mubr.f32.mxu0 %v2231_v21 }
 0x214   :  { %1916 = vmatprep.subr.mxu0 %v2231_v21 }
 0x216   :  { %1799 = vmatmul.mubr.msk.f32.vlgmr.msra.gmra.mrb[12].mxu0 %vm583_vm4, %v2234_v32 }
 0x217   :  { %1917 = vmatpush3.msra.mxu0 %v730_v34  ;;  %1918 = vmatprep.mubr.msk.f32.mxu0 %vm2233_vm3, %v2231_v21 }
 0x218   :  { %1863 = vmatprep.subr.bf16.mxu0 %v2061_v35 }
 0x21a   :  { %1919 = vmatmul.mubr.msk.f32.vlgmr.msra.gmra.mrb[14].mxu0 %vm583_vm4, %v2234_v32 }
 0x21b   :  { %1864 = vmatpush3.bf16.msra.mxu0 %v2063_v37  ;;  %v582_v37 = vld [vmem:[%s2494_s2] sm:$0x3f] }
 0x21c   :  { %1865 = vmatprep.subr.bf16.mxu0 %v2064_v38 }
 0x21f   :  { %1866 = vmatpush3.bf16.msra.mxu0 %v2066_v40  ;;  %v921_v40 = vsub.s32 2, %v2327_v2 }
 0x220   :  { %1867 = vmatprep.subr.bf16.mxu0 %v2067_v41  ;;  %v925_v41 = vsub.s32 4, %v2327_v2 }
 0x223   :  { %1868 = vmatpush3.bf16.msra.mxu0 %v2069_v43 }
 0x224   :  { %1869 = vmatprep.subr.bf16.mxu0 %v2070_v44 }
 0x227   :  { %1870 = vmatpush3.bf16.msra.mxu0 %v2072_v46 }
 0x228   :  { %1871 = vmatprep.subr.bf16.mxu0 %v2073_v47 }
 0x22b   :  { %1872 = vmatpush3.bf16.msra.mxu0 %v2075_v49 }
 0x22c   :  { %1873 = vmatprep.subr.bf16.mxu0 %v2076_v50 }
 0x22f   :  { %1874 = vmatpush3.bf16.msra.mxu0 %v2078_v52 }
 0x230   :  { %1875 = vmatprep.subr.bf16.mxu0 %v2079_v53 }
 0x233   :  { %1876 = vmatpush3.bf16.msra.mxu0 %v2081_v55 }
 0x234   :  { %1877 = vmatprep.subr.bf16.mxu0 %v2082_v56 }
 0x237   :  { %1878 = vmatpush3.bf16.msra.mxu0 %v2084_v58  ;;  %v2432_v58 = vsub.s32 1, %v2327_v2 }
 0x238   :  { %1941 = vmatprep.subr.mxu0 %v2231_v21 }
 0x2e1   :  { %v653_v59 = vpop.f32.mrb[8].mxu0 }
 0x2e2   :  { %v655_v60 = vpop.f32.mrb[9].mxu0  ;;  %v872_v62 = vmul.f32 0.125, %v653_v59  ;;  %v977_v59 = vsub.s32 3, %v2327_v2 }
 0x2e3   :  { %v873_v0 = vmul.f32 0.125, %v655_v60  ;;  %v981_v60 = vsub.s32 5, %v2327_v2 }
 0x2e4   :  { %v878_v5 = vmul.f32 %v872_v62, %v872_v62 }
 0x2e5   :  { %v724_v61 = vpop.f32.mrb[10].mxu0  ;;  %v879_v9 = vmul.f32 %v873_v0, %v873_v0 }
 0x2e6   :  { %v1915_v63 = vpop.f32.mrb[11].mxu0  ;;  %v874_v6 = vmul.f32 0.125, %v724_v61 }
 0x2e8   :  { %v880_v14 = vmul.f32 %v874_v6, %v874_v6 }
 0x2e9   :  { %v797_v3 = vpop.f32.mrb[12].mxu0 }
 0x2ea   :  { %v875_v7 = vmul.f32 0.125, %v797_v3  ;;  %v799_v8 = vpop.f32.mrb[13].mxu0 }
 0x2eb   :  { %v876_v10 = vmul.f32 0.125, %v799_v8 }
 0x2ec   :  { %v881_v11 = vsub.f32 %v875_v7, %v878_v5 }
 0x2ed   :  { %v882_v12 = vsub.f32 %v876_v10, %v879_v9  ;;  %v868_v13 = vpop.f32.mrb[14].mxu0 }
 0x2ee   :  { %v884_v15 = vmax.f32 %v881_v11, 0.0  ;;  %v877_v16 = vmul.f32 0.125, %v868_v13  ;;  %v1920_v17 = vpop.f32.mrb[15].mxu0 }
 0x2ef   :  { %v885_v18 = vmax.f32 %v882_v12, 0.0 }
 0x2f0   :  { %v887_v19 = vadd.f32 1e-05, %v884_v15  ;;  %v883_v20 = vsub.f32 %v877_v16, %v880_v14 }
 0x2f1   :  { %v888_v22 = vadd.f32 1e-05, %v885_v18 }
 0x2f2   :  { %2093 = vrsqrt.f32 %v887_v19  ;;  %v886_v23 = vmax.f32 %v883_v20, 0.0 }
 0x2f3   :  { %2095 = vrsqrt.f32 %v888_v22 }
 0x2f4   :  { %v889_v27 = vadd.f32 1e-05, %v886_v23 }
 0x2f6   :  { %2097 = vrsqrt.f32 %v889_v27  ;;  %v2085_v27 = vld [vmem:[#allocation8] sm:$0xff]  }
 0x2fc   :  { %v2094_v29 = vpop.eup %2093 }
 0x2fd   :  { %v2096_v31 = vpop.eup %2095 }
 0x2fe   :  { %v896_v33 = vcombine.low %v2094_v29, %v2096_v31  ;;  %v2087_v29 = vld [vmem:[#allocation8 + $0x10] sm:$0xff]   ;;  %v2089_v31 = vld [vmem:[#allocation8 + $0x20] sm:$0xff]  }
 0x300   :  { %v2098_v34 = vpop.eup %2097  ;;  %v903_v35 = vrot.slane %v896_v33, %v902_v30  ;;  %v2090_v33 = vld [vmem:[#allocation8 + $0x28] sm:$0xff]  }
 0x301   :  { %v910_v36 = vrot.slane %v2098_v34, %v902_v30  ;;  %v2091_v34 = vld [vmem:[#allocation8 + $0x30] sm:$0xff]  }
 0x303   :  { %v911_v38 = vcombine.low %v903_v35, %v910_v36  ;;  %v2092_v35 = vld [vmem:[#allocation8 + $0x38] sm:$0xff]  }
 0x305   :  { %v913_v42 = vmul.f32 %v911_v38, %v582_v37 }
 0x307   :  { %v918_v43 = vrot.slane %v913_v42, %v2422_v39  ;;  %v922_v44 = vrot.slane %v913_v42, %v921_v40  ;;  %v926_v45 = vrot.slane %v913_v42, %v925_v41 }
 0x309   :  { %v930_v46 = vmul.f32 %v918_v43, %v872_v62  ;;  %v931_v47 = vmul.f32 %v922_v44, %v873_v0  ;;  %v932_v48 = vmul.f32 %v926_v45, %v874_v6  ;;  %v962_v49 = vrot.slane %v922_v44, %v2422_v39 }
 0x30a   :  { %v958_v50 = vrot.slane %v918_v43, %v2422_v39  ;;  %v966_v62 = vrot.slane %v926_v45, %v2422_v39 }
 0x30b   :  { %v936_v51 = vcombine.low %v930_v46, %v931_v47  ;;  %v968_v52 = vmul.f32 %v962_v49, %v2380_v24  ;;  %v950_v55 = vrot.slane %v932_v48, %v902_v30  ;;  %v1279_v47 = vld [vmem:[%s2496_s4] sm:$0x3] }
 0x30c   :  { %v967_v53 = vmul.f32 %v958_v50, %v2378_v1  ;;  %v969_v3 = vmul.f32 %v2382_v26, %v966_v62 }
 0x30d   :  { %v943_v54 = vrot.slane %v936_v51, %v902_v30  ;;  %v2088_v30 = vld [vmem:[#allocation8 + $0x18] sm:$0xff]  }
 0x30f   :  { %v951_v56 = vcombine.low %v943_v54, %v950_v55 }
 0x311   :  { %v952_v57 = vrot.slane %v951_v56, 7 }
 0x313   :  { %v954_v61 = vsub.f32 %v582_v37, %v952_v57 }
 0x315   :  { %v978_v63 = vrot.slane %v954_v61, %v977_v59  ;;  %v982_v0 = vrot.slane %v954_v61, %v981_v60  ;;  %v974_v24 = vrot.slane %v954_v61, %v2432_v58 }
 0x317   :  { %v993_v1 = vrot.slane %v978_v63, %v2432_v58  ;;  %v997_v5 = vrot.slane %v982_v0, %v2432_v58  ;;  %v989_v6 = vrot.slane %v974_v24, %v2432_v58 }
 0x319   :  { %v999_v7 = vadd.f32 %v993_v1, %v968_v52  ;;  %v1000_v8 = vadd.f32 %v997_v5, %v969_v3  ;;  %v998_v9 = vadd.f32 %v989_v6, %v967_v53 }
 0x31b   :  { %v1002_v10 = vmax.f32 %v999_v7, 0.0  ;;  %v1003_v2 = vmax.f32 %v1000_v8, 0.0  ;;  %v1001_v11 = vmax.f32 %v998_v9, 0.0 }
 0x31d   :  { %v1005_v12 = vpack.c.bf16 %v1002_v10, %v1002_v10  ;;  %v1006_v13 = vpack.c.bf16 %v1003_v2, %v1003_v2  ;;  %v1004_v14 = vpack.c.bf16 %v1001_v11, %v1001_v11  ;;  %v1550_v11 = vld [vmem:[%s2498_s6] sm:$0x3] }
 0x31f   :  { %1231 = vmatprep.mubr.bf16.mxu0 %v1005_v12  ;;  %1938 = vmatmul.mubr.bf16.vlgmr.msra.gmra.mrb[4].mxu1 %v1006_v13 }
 0x320   :  { %1232 = vmatmul.mubr.bf16.vlgmr.msra.gmra.mrb[16].mxu0 %v1004_v14  ;;  %1967 = vmatprep.mubr.msk.bf16.mxu1 %vm2233_vm3, %v2231_v21 }
 0x321   :  { %1943 = vmatprep.mubr.msk.f32.mxu0 %vm2233_vm3, %v2231_v21  ;;  %1952 = vmatpush3.bf16.msra.mxu1 %v2085_v27 }
 0x322   :  { %1953 = vmatprep.subr.bf16.mxu1 %v2231_v21 }
 0x325   :  { %1954 = vmatpush3.bf16.msra.mxu1 %v2086_v28 }
 0x326   :  { %1955 = vmatprep.subr.bf16.mxu1 %v2231_v21 }
 0x329   :  { %1956 = vmatpush3.bf16.msra.mxu1 %v2087_v29 }
 0x32a   :  { %1957 = vmatprep.subr.bf16.mxu1 %v2231_v21 }
 0x32d   :  { %1958 = vmatpush3.bf16.msra.mxu1 %v2088_v30 }
 0x32e   :  { %1959 = vmatprep.subr.bf16.mxu1 %v2231_v21 }
 0x331   :  { %1960 = vmatpush3.bf16.msra.mxu1 %v2089_v31 }
 0x332   :  { %1961 = vmatprep.subr.bf16.mxu1 %v2231_v21 }
 0x335   :  { %1962 = vmatpush3.bf16.msra.mxu1 %v2090_v33 }
 0x336   :  { %1963 = vmatprep.subr.bf16.mxu1 %v2231_v21 }
 0x339   :  { %1964 = vmatpush3.bf16.msra.mxu1 %v2091_v34 }
 0x33a   :  { %1965 = vmatprep.subr.bf16.mxu1 %v2231_v21 }
 0x33d   :  { %1966 = vmatpush3.bf16.msra.mxu1 %v2092_v35 }
 0x3f2   :  { %v1273_v26 = vpop.f32.mrb[4].mxu1 }
 0x3f3   :  { %v1879_v15 = vpop.f32.mrb[16].mxu0  ;;  %v1939_v16 = vpop.f32.mrb[5].mxu1 }
 0x3f4   :  { %v1880_v17 = vpop.f32.mrb[17].mxu0  ;;  %v1276_v18 = vpop.f32.mrb[6].mxu1 }
 0x3f5   :  { %v1881_v19 = vadd.f32 %v1880_v17, %v1879_v15  ;;  %v1882_v20 = vpop.f32.mrb[18].mxu0  ;;  %v1940_v22 = vpop.f32.mrb[7].mxu1 }
 0x3f6   :  { %v1883_v23 = vpop.f32.mrb[19].mxu0 }
 0x3f7   :  { %v1274_v4 = vadd.f32 %v1881_v19, %v1273_v26 }
 0x3f9   :  { %v1350_v25 = vmul.f32 %v1274_v4, %v1274_v4  ;;  %1942 = vmatpush3.msra.mxu0 %v1274_v4 }
 0x3fa   :  { %1944 = vmatmul.mubr.msk.f32.vlgmr.msra.gmra.mrb[20].mxu0 %vm583_vm4, %v2234_v32  ;;  %1946 = vmatprep.subr.mxu0 %v2231_v21 }
 0x3fb   :  { %1947 = vmatpush3.msra.mxu0 %v1350_v25  ;;  %1948 = vmatprep.mubr.msk.f32.mxu0 %vm2233_vm3, %v2231_v21 }
 0x3fc   :  { %1971 = vmatprep.subr.mxu0 %v2231_v21 }
 0x3fe   :  { %1949 = vmatmul.mubr.msk.f32.vlgmr.msra.gmra.mrb[22].mxu0 %vm583_vm4, %v2234_v32 }
 0x3ff   :  { %1973 = vmatprep.mubr.msk.f32.mxu0 %vm2233_vm3, %v2231_v21 }
 0x4cd   :  { %v1346_v36 = vpop.f32.mrb[20].mxu0 }
 0x4ce   :  { %v1421_v37 = vmul.f32 0.125, %v1346_v36  ;;  %v1945_v38 = vpop.f32.mrb[21].mxu0 }
 0x4d0   :  { %v1423_v41 = vmul.f32 %v1421_v37, %v1421_v37 }
 0x4d1   :  { %v1417_v40 = vpop.f32.mrb[22].mxu0 }
 0x4d2   :  { %v1422_v42 = vmul.f32 0.125, %v1417_v40  ;;  %v1950_v43 = vpop.f32.mrb[23].mxu0 }
 0x4d4   :  { %v1424_v44 = vsub.f32 %v1422_v42, %v1423_v41 }
 0x4d6   :  { %v1425_v45 = vmax.f32 %v1424_v44, 0.0 }
 0x4d8   :  { %v1426_v46 = vadd.f32 1e-05, %v1425_v45 }
 0x4da   :  { %2099 = vrsqrt.f32 %v1426_v46 }
 0x4e4   :  { %v2100_v48 = vpop.eup %2099 }
 0x4e5   :  { %v1428_v49 = vmul.f32 %v2100_v48, %v1279_v47 }
 0x4e7   :  { %v1429_v50 = vmul.f32 %v1428_v49, %v1421_v37  ;;  %v1437_v52 = vrot.slane %v1428_v49, %v2422_v39 }
 0x4e9   :  { %v1431_v51 = vrot.slane %v1429_v50, 7  ;;  %v1438_v54 = vmul.f32 %v1437_v52, %v1274_v4 }
 0x4eb   :  { %v1433_v53 = vsub.f32 %v1279_v47, %v1431_v51 }
 0x4ed   :  { %v1442_v55 = vrot.slane %v1433_v53, %v2432_v58 }
 0x4ef   :  { %v1443_v56 = vadd.f32 %v1442_v55, %v1438_v54 }
 0x4f1   :  { %v1444_v57 = vmax.f32 %v1443_v56, 0.0 }
 0x4f3   :  { %v1445_v59 = vpack.c.bf16 %v1444_v57, %v1444_v57 }
 0x4f5   :  { %1968 = vmatmul.mubr.bf16.vlgmr.msra.gmra.mrb[8].mxu1 %v1445_v59 }
 0x5c8   :  { %v1544_v60 = vpop.f32.mrb[8].mxu1 }
 0x5c9   :  { %v1621_v61 = vmul.f32 %v1544_v60, %v1544_v60  ;;  %v1969_v62 = vpop.f32.mrb[9].mxu1  ;;  %1972 = vmatpush3.msra.mxu0 %v1544_v60 }
 0x5ca   :  { %v1547_v63 = vpop.f32.mrb[10].mxu1  ;;  %1974 = vmatmul.mubr.msk.f32.vlgmr.msra.gmra.mrb[24].mxu0 %vm583_vm4, %v2234_v32  ;;  %1976 = vmatprep.subr.mxu0 %v2231_v21 }
 0x5cb   :  { %v1970_v0 = vpop.f32.mrb[11].mxu1  ;;  %1977 = vmatpush3.msra.mxu0 %v1621_v61  ;;  %1978 = vmatprep.mubr.msk.f32.mxu0 %vm2233_vm3, %v2231_v21 }
 0x5ce   :  { %1979 = vmatmul.mubr.msk.f32.vlgmr.msra.gmra.mrb[26].mxu0 %vm583_vm4, %v2234_v32 }
 0x69d   :  { %v1617_v24 = vpop.f32.mrb[24].mxu0 }
 0x69e   :  { %v1692_v1 = vmul.f32 0.125, %v1617_v24  ;;  %v1975_v3 = vpop.f32.mrb[25].mxu0 }
 0x6a0   :  { %v1694_v6 = vmul.f32 %v1692_v1, %v1692_v1 }
 0x6a1   :  { %v1688_v5 = vpop.f32.mrb[26].mxu0 }
 0x6a2   :  { %v1693_v7 = vmul.f32 0.125, %v1688_v5  ;;  %v1980_v8 = vpop.f32.mrb[27].mxu0 }
 0x6a4   :  { %v1695_v9 = vsub.f32 %v1693_v7, %v1694_v6 }
 0x6a6   :  { %v1696_v10 = vmax.f32 %v1695_v9, 0.0 }
 0x6a8   :  { %v1697_v2 = vadd.f32 1e-05, %v1696_v10 }
 0x6aa   :  { %2101 = vrsqrt.f32 %v1697_v2 }
 0x6b4   :  { %v2102_v12 = vpop.eup %2101 }
 0x6b5   :  { %v1699_v21 = vmul.f32 %v2102_v12, %v1550_v11 }
 0x6b7   :  { %v1700_v13 = vmul.f32 %v1699_v21, %v1692_v1  ;;  %v1708_v32 = vrot.slane %v1699_v21, %v2422_v39 }
 0x6b9   :  { %v1702_v14 = vrot.slane %v1700_v13, 7  ;;  %v1709_v26 = vmul.f32 %v1708_v32, %v1544_v60 }
 0x6bb   :  { %v1704_v15 = vsub.f32 %v1550_v11, %v1702_v14 }
 0x6bd   :  { %v1713_v16 = vrot.slane %v1704_v15, %v2432_v58 }
 0x6bf   :  { %v1714_v17 = vadd.f32 %v1713_v16, %v1709_v26 }
 0x6c1   :  { %v1715_v18 = vmax.f32 %v1714_v17, 0.0 }
 0x6c3   :  { %1716 = vst [vmem:[#allocation10] sm:$0xff] %v1715_v18 }
 0x6c4   :  { %2202 = shalt.err (!%p2199_p8)
}
 0x6c5   :  { %s2203_s10 = scalar_lea.hbm %s2499_s7, 128 }
 0x6c6   :  { %p2204_p9 = scmp.ne.s32.totalorder %s2499_s7, %s2203_s10  ;;  %p2207_p10 = scmp.lt.u32.totalorder %s2203_s10, %s2499_s7 }
 0x6c8   :  { %p2209_p11 = pnand %p2207_p10, %p2204_p9 }
 0x6ca   :  { %2212 = shalt.err (!%p2209_p11)
}
 0x6cb   :  { %1726 = dma.vmem_to_hbm [thread:$0]  %s1724_s30, 128, %s2499_s7, [#allocation4]  }
 0x6cc   :  { %2219 = dma.done.wait [#allocation4], 128  }
 0x6cd   :  { %2220 = vsyncadd [#allocation4], 4294967168 }
 0x6ce   :  { %1730 = vsyncpa [#allocation3], 1 }
 0x6cf   :  { %1731 = vsyncpa [#allocation6], 1 }
 0x6d0   :  { %1732 = vsyncpa [#allocation9], 1 }
 0x6d1   :  { %1733 = vsyncpa [#allocation4], 1 }

</bundles_post_ra>
